<compile_context>
chip_gen: v7x
topology: tpu7x:2x2x1
jax: 0.10.0
libtpu: 0.0.40
codegen_flags: <defaults>
</compile_context>

<pallas_src>
import math

import jax
import jax.numpy as jnp
from jax import lax
from jax.experimental import pallas as pl
from jax.experimental.pallas import tpu as pltpu

_LANE = 128


# --------------------------------------------------------------------------- #
# Kernel
# --------------------------------------------------------------------------- #
def _tmat_kernel(x_ref, w_ref, tmatb_ref, out_ref, acc_ref):
    # x_ref:     (tb, td)                 bf16 feature tile
    # w_ref:     (G_pad, td)              bf16 Linear weight tile (PyTorch (G,D) layout)
    # tmatb_ref: (n_grammars, G_pad)      f32 transition matrix, bias pre-folded
    # out_ref:   (tb, n_grammars, G_pad)  f32
    # acc_ref:   (tb, G_pad)              f32 accumulator scratch (lives across K steps)
    k = pl.program_id(1)

    @pl.when(k == 0)
    def _():
        acc_ref[...] = jnp.zeros_like(acc_ref)

    acc_ref[...] += lax.dot_general(
        x_ref[...], w_ref[...],
        dimension_numbers=(((1,), (1,)), ((), ())),      # contract over D
        preferred_element_type=jnp.float32)              # f32 MXU accumulation

    @pl.when(k == pl.num_programs(1) - 1)
    def _():
        # Broadcast logits over the (unconditional) bigram-context axis.
        out_ref[...] = acc_ref[...][:, None, :] + tmatb_ref[...][None, :, :]


# --------------------------------------------------------------------------- #
# Parameter preparation (once per parameter update)
# --------------------------------------------------------------------------- #
def prepare_params(weight, bias, tmat):
    """Fold bias into the transition matrix, pad G to a multiple of 128
    (lane-dense stores), store the weight in bf16.

    Returns (weight_pad bf16 (G_pad, D), tmatb_pad f32 (n_grammars, G_pad), G).
    """
    G, D = weight.shape
    n_g, G2 = tmat.shape
    assert G2 == G and bias.shape == (G,)
    g_pad = -(-G // _LANE) * _LANE
    w_pad = jnp.zeros((g_pad, D), jnp.bfloat16).at[:G, :].set(
        weight.astype(jnp.bfloat16))
    tmatb = tmat.astype(jnp.float32) + bias.astype(jnp.float32)[None, :]
    tmatb_pad = jnp.zeros((n_g, g_pad), jnp.float32).at[:, :G].set(tmatb)
    return w_pad, tmatb_pad, G


# --------------------------------------------------------------------------- #
# Wrappers
# --------------------------------------------------------------------------- #
def transition_matrix_batched(x, w_pad, tmatb_pad, *, valid_g=None,
                              batch_tile=256, d_tile=512):
    """transitionMatrix(x) for 2-D x (B, D) -> (B, n_grammars, G[_pad])."""
    assert x.ndim == 2
    B, D = x.shape
    g_pad, d_w = w_pad.shape
    n_g, g_pad2 = tmatb_pad.shape
    assert d_w == D and g_pad2 == g_pad and g_pad % _LANE == 0

    # Batch tile: one grid step for small B, else a large 8/128-friendly tile.
    tb = B if B <= batch_tile else batch_tile
    # K tile over D: only split when D divides evenly into 128-multiple tiles.
    td = d_tile if (D > d_tile and d_tile % _LANE == 0 and D % d_tile == 0) else D
    nb = pl.cdiv(B, tb)
    nk = D // td

    # bf16 activations: halves activation DMA; matmul accumulation stays f32.
    x_bf16 = x.astype(jnp.bfloat16)

    # Grid-invariant operands: single-buffer (double-buffering buys no overlap,
    # doubles VMEM).  Weight varies along K, so only single-buffer it when
    # there is exactly one K step.
    tmatb_spec = pl.BlockSpec((n_g, g_pad), lambda i, k: (0, 0),
                              pipeline_mode=pl.Buffered(1))
    if nk == 1:
        w_spec = pl.BlockSpec((g_pad, td), lambda i, k: (0, k),
                              pipeline_mode=pl.Buffered(1))
    else:
        w_spec = pl.BlockSpec((g_pad, td), lambda i, k: (0, k))

    # VMEM budget: double-buffered x/out, weight per policy above, invariant
    # tmatb, f32 accumulator scratch.  Clamp to a v7x-safe ceiling.
    vmem_bytes = (2 * tb * td * 2
                  + (1 if nk == 1 else 2) * g_pad * td * 2
                  + n_g * g_pad * 4
                  + 2 * tb * n_g * g_pad * 4
                  + tb * g_pad * 4)
    vmem_limit = int(min(max(2 * vmem_bytes, 16 << 20), 64 << 20))

    cost = pl.CostEstimate(
        flops=2 * B * D * g_pad + B * n_g * g_pad,
        transcendentals=0,
        bytes_accessed=(x_bf16.size * 2 + nb * w_pad.size * 2
                        + tmatb_pad.size * 4 + B * n_g * g_pad * 4))

    out = pl.pallas_call(
        _tmat_kernel,
        out_shape=jax.ShapeDtypeStruct((B, n_g, g_pad), jnp.float32),
        grid=(nb, nk),                                   # reduction axis last
        in_specs=[
            pl.BlockSpec((tb, td), lambda i, k: (i, k)),
            w_spec,
            tmatb_spec,
        ],
        out_specs=pl.BlockSpec((tb, n_g, g_pad), lambda i, k: (i, 0, 0)),
        scratch_shapes=[pltpu.VMEM((tb, g_pad), jnp.float32)],
        compiler_params=pltpu.CompilerParams(
            dimension_semantics=("parallel", "arbitrary"),
            vmem_limit_bytes=vmem_limit),
        cost_estimate=cost,
    )(x_bf16, w_pad, tmatb_pad)

    if valid_g is not None and valid_g != g_pad:
        out = out[:, :, :valid_g]
    return out


def transition_matrix_single(x, w_pad, tmatb_pad, *, valid_g=None, **kwargs):
    """transitionMatrix(x) / forward(x) tensor math for a 1-D feature vector."""
    assert x.ndim == 1
    out = transition_matrix_batched(x.reshape(1, -1), w_pad, tmatb_pad,
                                    valid_g=valid_g, **kwargs)
    return out[0]


# --------------------------------------------------------------------------- #
# Parameter init (matches the module's shapes / init schemes)
# --------------------------------------------------------------------------- #
def init_params(key, input_dim, n_primitives, arg_counts):
    """G = len(grammar) + 1 ; n_grammars = sum(arity of each primitive) + 2."""
    G = n_primitives + 1
    n_grammars = sum(arg_counts) + 2

    k_tm, k_w, k_b = jax.random.split(key, 3)

    bound_tm = math.sqrt(6.0 / (n_grammars + G))         # xavier_uniform
    tmat = jax.random.uniform(k_tm, (n_grammars, G), jnp.float32,
                              -bound_tm, bound_tm)

    bound_l = 1.0 / math.sqrt(input_dim)                  # nn.Linear default init
    weight = jax.random.uniform(k_w, (G, input_dim), jnp.float32,
                                -bound_l, bound_l)
    bias = jax.random.uniform(k_b, (G,), jnp.float32, -bound_l, bound_l)
    return weight, bias, tmat


# --------------------------------------------------------------------------- #
# Demo / self-check
# --------------------------------------------------------------------------- #
if __name__ == "__main__":
    key = jax.random.PRNGKey(0)

    # Small synthetic "grammar": 7 primitives with these argument counts.
    input_dim = 32
    arg_counts = [2, 1, 0, 3, 1, 2, 1]            # sum = 10 -> n_grammars = 12
    n_primitives = len(arg_counts)                 # G = len(grammar) + 1 = 8

    k_params, k_x, k_xb, k_p2, k_x2 = jax.random.split(key, 5)
    weight, bias, tmat = init_params(k_params, input_dim, n_primitives, arg_counts)
    w_pad, tmatb_pad, G = prepare_params(weight, bias, tmat)
    n_grammars = tmat.shape[0]

    # Reference uses the same bf16-rounded operands the kernel consumes
    # (accumulation is f32 in both), so tolerances can stay tight.
    w_bf = weight.astype(jnp.bfloat16).astype(jnp.float32)

    # ---- forward(x) / transitionMatrix(x): single feature vector ----------- #
    x = jax.random.normal(k_x, (input_dim,), jnp.float32)
    out = jax.block_until_ready(
        transition_matrix_single(x, w_pad, tmatb_pad, valid_g=G))
    x_bf = x.astype(jnp.bfloat16).astype(jnp.float32)
    ref = (x_bf @ w_bf.T + bias)[None, :] + tmat
    assert out.shape == (n_grammars, G)
    assert jnp.allclose(out, ref, atol=1e-4, rtol=1e-4)

    # ---- batched transitionMatrix(x), single lane-dense grid step ---------- #
    B = 20
    xb = jax.random.normal(k_xb, (B, input_dim), jnp.float32)
    xb_bf = xb.astype(jnp.bfloat16).astype(jnp.float32)
    ref_b = (xb_bf @ w_bf.T + bias)[:, None, :] + tmat[None, :, :]

    out_b = jax.block_until_ready(
        transition_matrix_batched(xb, w_pad, tmatb_pad, valid_g=G))
    assert out_b.shape == (B, n_grammars, G)
    assert jnp.allclose(out_b, ref_b, atol=1e-4, rtol=1e-4)

    # Same input through a multi-step batch grid with a padded final tile.
    out_b2 = jax.block_until_ready(
        transition_matrix_batched(xb, w_pad, tmatb_pad, valid_g=G, batch_tile=8))
    assert jnp.allclose(out_b2, ref_b, atol=1e-4, rtol=1e-4)

    # ---- K-tiled path: D split over the "arbitrary" reduction grid axis ---- #
    input_dim2 = 256
    weight2, bias2, tmat2 = init_params(k_p2, input_dim2, n_primitives, arg_counts)
    w2_pad, tmatb2_pad, _ = prepare_params(weight2, bias2, tmat2)
    x2 = jax.random.normal(k_x2, (16, input_dim2), jnp.float32)
    out2 = jax.block_until_ready(
        transition_matrix_batched(x2, w2_pad, tmatb2_pad, valid_g=G, d_tile=128))
    w2_bf = weight2.astype(jnp.bfloat16).astype(jnp.float32)
    x2_bf = x2.astype(jnp.bfloat16).astype(jnp.float32)
    ref2 = (x2_bf @ w2_bf.T + bias2)[:, None, :] + tmat2[None, :, :]
    assert out2.shape == (16, n_grammars, G)
    assert jnp.allclose(out2, ref2, atol=1e-4, rtol=1e-4)

    # TODO(synk): wrapping rows of the transition matrix into Grammar /
    # ContextualGrammar objects (forward / grammarFromVector) and the
    # summary-driven uses/mask/normalizer tables in batchedLogLikelihoods are
    # symbolic Python bookkeeping with no Pallas equivalent.

    print("KERNEL_OK")
</pallas_src>

<mosaic_0001>
module attributes {stable_mosaic.version = 11 : i64} {
  func.func @_tmat_kernel(%arg0: i32, %arg1: i32, %arg2: memref<1x32xbf16, #tpu.memory_space<vmem>>, %arg3: memref<128x32xbf16, #tpu.memory_space<vmem>>, %arg4: memref<12x128xf32, #tpu.memory_space<vmem>>, %arg5: memref<1x12x128xf32, #tpu.memory_space<vmem>>, %arg6: memref<1x128xf32, #tpu.memory_space<vmem>>) attributes {dimension_semantics = [#tpu.dimension_semantics<parallel>, #tpu.dimension_semantics<arbitrary>], iteration_bounds = array<i64: 1, 1>, scalar_prefetch = 0 : i64, scratch_operands = 1 : i64, tpu.core_type = #tpu.core_type<tc>, window_params = [{transform_indices = @transform_0, window_bounds = array<i64: 1, 32>}, {pipeline_mode = #tpu.pipeline_mode<synchronous>, transform_indices = @transform_1, window_bounds = array<i64: 128, 32>}, {pipeline_mode = #tpu.pipeline_mode<synchronous>, transform_indices = @transform_2, window_bounds = array<i64: 12, 128>}, {transform_indices = @transform_3, window_bounds = array<i64: 1, 12, 128>}]} {
    %c0_i32 = arith.constant 0 : i32
    %0 = arith.cmpi eq, %arg1, %c0_i32 : i32
    %1 = arith.extui %0 : i1 to i32
    %c0_i32_0 = arith.constant 0 : i32
    %2 = arith.cmpi ne, %1, %c0_i32_0 : i32
    scf.if %2 {
      %cst_10 = arith.constant 0.000000e+00 : f32
      %12 = vector.broadcast %cst_10 : f32 to vector<1x128xf32>
      %c0_11 = arith.constant 0 : index
      %c0_12 = arith.constant 0 : index
      %13 = vector.load %arg6[%c0_11, %c0_12] : memref<1x128xf32, #tpu.memory_space<vmem>>, vector<1x128xf32>
      tpu.vector_store %arg6[%c0_11, %c0_12], %12 {strides = array<i32>} : memref<1x128xf32, #tpu.memory_space<vmem>>, vector<1x128xf32>,
    } else {
    }
    %c0 = arith.constant 0 : index
    %c0_1 = arith.constant 0 : index
    %3 = vector.load %arg6[%c0, %c0_1] : memref<1x128xf32, #tpu.memory_space<vmem>>, vector<1x128xf32>
    %c0_2 = arith.constant 0 : index
    %c0_3 = arith.constant 0 : index
    %4 = vector.load %arg2[%c0_2, %c0_3] : memref<1x32xbf16, #tpu.memory_space<vmem>>, vector<1x32xbf16>
    %c0_4 = arith.constant 0 : index
    %c0_5 = arith.constant 0 : index
    %5 = vector.load %arg3[%c0_4, %c0_5] : memref<128x32xbf16, #tpu.memory_space<vmem>>, vector<128x32xbf16>
    %cst = arith.constant dense<0.000000e+00> : vector<1x128xf32>
    %6 = tpu.matmul %4, %5, %cst {dimension_numbers = #tpu.dot_dimension_numbers<[1], [1], [0], [0], [0, 0, 1, 0], [], []>} : vector<1x32xbf16>, vector<128x32xbf16>, vector<1x128xf32> -> vector<1x128xf32>
    %7 = arith.addf %3, %6 : vector<1x128xf32>
    %c0_6 = arith.constant 0 : index
    %c0_7 = arith.constant 0 : index
    %8 = vector.load %arg6[%c0_6, %c0_7] : memref<1x128xf32, #tpu.memory_space<vmem>>, vector<1x128xf32>
    tpu.vector_store %arg6[%c0_6, %c0_7], %7 {strides = array<i32>} : memref<1x128xf32, #tpu.memory_space<vmem>>, vector<1x128xf32>,
    %c0_i32_8 = arith.constant 0 : i32
    %9 = arith.cmpi eq, %arg1, %c0_i32_8 : i32
    %10 = arith.extui %9 : i1 to i32
    %c0_i32_9 = arith.constant 0 : i32
    %11 = arith.cmpi ne, %10, %c0_i32_9 : i32
    scf.if %11 {
      %c0_10 = arith.constant 0 : index
      %c0_11 = arith.constant 0 : index
      %12 = vector.load %arg6[%c0_10, %c0_11] : memref<1x128xf32, #tpu.memory_space<vmem>>, vector<1x128xf32>
      %13 = vector.shape_cast %12 : vector<1x128xf32> to vector<1x1x128xf32>
      %c0_12 = arith.constant 0 : index
      %c0_13 = arith.constant 0 : index
      %14 = vector.load %arg4[%c0_12, %c0_13] : memref<12x128xf32, #tpu.memory_space<vmem>>, vector<12x128xf32>
      %15 = vector.shape_cast %14 : vector<12x128xf32> to vector<1x12x128xf32>
      %16 = vector.broadcast %13 : vector<1x1x128xf32> to vector<1x12x128xf32>
      %17 = arith.addf %16, %15 : vector<1x12x128xf32>
      %c0_14 = arith.constant 0 : index
      %c0_15 = arith.constant 0 : index
      %c0_16 = arith.constant 0 : index
      %18 = vector.load %arg5[%c0_14, %c0_15, %c0_16] : memref<1x12x128xf32, #tpu.memory_space<vmem>>, vector<1x12x128xf32>
      tpu.vector_store %arg5[%c0_14, %c0_15, %c0_16], %17 {strides = array<i32>} : memref<1x12x128xf32, #tpu.memory_space<vmem>>, vector<1x12x128xf32>,
    } else {
    }
    return
  }
  func.func @transform_0(%arg0: i32, %arg1: i32) -> (i32, i32) {
    %c0_i32 = arith.constant 0 : i32
    return %arg0, %arg1 : i32, i32
  }
  func.func @transform_1(%arg0: i32, %arg1: i32) -> (i32, i32) {
    %c0_i32 = arith.constant 0 : i32
    %c0_i32_0 = arith.constant 0 : i32
    return %c0_i32, %arg1 : i32, i32
  }
  func.func @transform_2(%arg0: i32, %arg1: i32) -> (i32, i32) {
    %c0_i32 = arith.constant 0 : i32
    %c0_i32_0 = arith.constant 0 : i32
    %c0_i32_1 = arith.constant 0 : i32
    return %c0_i32, %c0_i32_0 : i32, i32
  }
  func.func @transform_3(%arg0: i32, %arg1: i32) -> (i32, i32, i32) {
    %c0_i32 = arith.constant 0 : i32
    %c0_i32_0 = arith.constant 0 : i32
    %c0_i32_1 = arith.constant 0 : i32
    return %arg0, %c0_i32, %c0_i32_0 : i32, i32, i32
  }
}

</mosaic_0001>

<bundles_post_ra>
// kernel: tpu_custom_call.1
= control target key start
LH: loop header
LB: loop body
LE: loop exit
PB: predicated region body
PF: predicated region fallthrough
CT: control target
= control target key end

     0   :  { %vm78_vm0 = vcmask 261120   ;;  %v217_v0 = vmov 0.0   ;;  %vm218_vm1 = vmmov 0   ;;  %s287_s1 = inlined_call_operand.vmem [shape: bf16[128,32], index: 1, kind: input, shape index: {}]   ;;  %s288_s0 = inlined_call_operand.vmem [shape: bf16[1,32], index: 0, kind: input, shape index: {}]   ;;  %s289_s2 = inlined_call_operand.vmem [shape: f32[12,128], index: 2, kind: input, shape index: {}]   ;;  %s290_s3 = inlined_call_operand.vmem [shape: f32[1,12,128], index: 3, kind: output, shape index: {}]  }
   0x1   :  { %187 = vmatprep.subr.bf16.mxu0 %v217_v0  ;;  %19 = vst [vmem:[#allocation2] sm:$0x1] %v217_v0  ;;  %v209_v1 = vld [vmem:[%s287_s1] sm:$0xff]   ;;  %203 = vmatprep.mubr.msk.bf16.mxu0 %vm218_vm1, %v217_v0  ;;  %v210_v3 = vld [vmem:[%s287_s1 + $0x8] sm:$0xff]   ;;  %v211_v5 = vld [vmem:[%s287_s1 + $0x10] sm:$0xff]  }
   0x2   :  { %v83_v2 = vsel %vm78_vm0, %v209_v1, 0  ;;  %v86_v4 = vsel %vm78_vm0, %v210_v3, 0  ;;  %v89_v6 = vsel %vm78_vm0, %v211_v5, 0  ;;  %v212_v7 = vld [vmem:[%s287_s1 + $0x18] sm:$0xff]   ;;  %v213_v9 = vld [vmem:[%s287_s1 + $0x20] sm:$0xff]   ;;  %v214_v11 = vld [vmem:[%s287_s1 + $0x28] sm:$0xff]  }
   0x3   :  { %188 = vmatpush3.bf16.xpose.msra.mxu0 %v83_v2  ;;  %v92_v8 = vsel %vm78_vm0, %v212_v7, 0  ;;  %v95_v10 = vsel %vm78_vm0, %v213_v9, 0  ;;  %v98_v12 = vsel %vm78_vm0, %v214_v11, 0  ;;  %v215_v13 = vld [vmem:[%s287_s1 + $0x30] sm:$0xff]   ;;  %v216_v15 = vld [vmem:[%s287_s1 + $0x38] sm:$0xff]   ;;  %v152_v24 = vld [vmem:[%s289_s2] sm:$0xff] }
   0x4   :  { %189 = vmatprep.subr.bf16.mxu0 %v217_v0  ;;  %v101_v14 = vsel %vm78_vm0, %v215_v13, 0  ;;  %v104_v16 = vsel %vm78_vm0, %v216_v15, 0  ;;  %v21_v17 = vld [vmem:[%s288_s0] sm:$0x1]  ;;  %v153_v25 = vld [vmem:[%s289_s2 + $0x8] sm:$0xf] }
   0x8   :  { %v20_v18 = vld [vmem:[#allocation2] sm:$0x1] }
   0xb   :  { %190 = vmatpush3.bf16.xpose.msra.mxu0 %v86_v4 }
   0xc   :  { %191 = vmatprep.subr.bf16.mxu0 %v217_v0 }
  0x13   :  { %192 = vmatpush3.bf16.xpose.msra.mxu0 %v89_v6 }
  0x14   :  { %193 = vmatprep.subr.bf16.mxu0 %v217_v0 }
  0x1b   :  { %194 = vmatpush3.bf16.xpose.msra.mxu0 %v92_v8 }
  0x1c   :  { %195 = vmatprep.subr.bf16.mxu0 %v217_v0 }
  0x23   :  { %196 = vmatpush3.bf16.xpose.msra.mxu0 %v95_v10 }
  0x24   :  { %197 = vmatprep.subr.bf16.mxu0 %v217_v0 }
  0x2b   :  { %198 = vmatpush3.bf16.xpose.msra.mxu0 %v98_v12 }
  0x2c   :  { %199 = vmatprep.subr.bf16.mxu0 %v217_v0 }
  0x33   :  { %200 = vmatpush3.bf16.xpose.msra.mxu0 %v101_v14 }
  0x34   :  { %201 = vmatprep.subr.bf16.mxu0 %v217_v0 }
  0x3b   :  { %202 = vmatpush3.bf16.xpose.msra.mxu0 %v104_v16 }
  0x42   :  { %204 = vmatmul.mubr.msk.bf16.vlgmr.msra.gmra.mrb[0].mxu0 %vm78_vm0, %v21_v17 }
 0x115   :  { %v140_v19 = vpop.f32.mrb[0].mxu0 }
 0x116   :  { %v146_v20 = vadd.f32 %v140_v19, %v20_v18  ;;  %v205_v21 = vpop.f32.mrb[1].mxu0 }
 0x117   :  { %v143_v22 = vpop.f32.mrb[2].mxu0 }
 0x118   :  { %147 = vst [vmem:[#allocation2] sm:$0x1] %v146_v20  ;;  %v206_v23 = vpop.f32.mrb[3].mxu0 }
 0x11f   :  { %v177_v26 = vld [vmem:[#allocation2] ss:$0 sm:$0xff] }
 0x120   :  { %v160_v27 = vadd.f32 %v177_v26, %v152_v24  ;;  %v161_v28 = vadd.f32 %v177_v26, %v153_v25 }
 0x122   :  { %162 = vst [vmem:[%s290_s3] sm:$0xff] %v160_v27  ;;  %163 = vst [vmem:[%s290_s3 + $0x8] sm:$0xf] %v161_v28 }

</bundles_post_ra>
